<compile_context>
chip_gen: v5e
topology: v5e:2x2
jax: 0.10.0
libtpu: 0.0.40
codegen_flags: <defaults>
</compile_context>

<pallas_src>
import jax
import jax.numpy as jnp
from jax.experimental import pallas as pl
from jax.experimental.pallas import tpu as pltpu

_LANE = 128


def _round_up(x, m):
    return ((x + m - 1) // m) * m


def _ggm_head_kernel(x_ref, wt_ref, b_ref, o_ref):
    # x_ref:  (tm, H)      activation tile (streamed over the batch grid axis)
    # wt_ref: (H, 128)     pre-transposed, lane-padded weight (resident in VMEM)
    # b_ref:  (1, N)       f32 bias (resident)
    # o_ref:  (tm, N)      narrow output tile (HBM side stays un-padded)
    y = jnp.dot(x_ref[...], wt_ref[...], preferred_element_type=jnp.float32)
    n = o_ref.shape[-1]
    o_ref[...] = (y[:, :n] + b_ref[...]).astype(o_ref.dtype)


def prepare_ggm_head_params(weight, bias):
    """One-time parameter prep (hoisted out of the per-call path).

    weight: (N, H) PyTorch nn.Linear layout; bias: (N,)
    Returns:
      w_t: (H, 128) f32 — transposed + zero lane-padded so the MXU consumes it directly.
      b2d: (1, N)  f32 — bias row for the in-kernel f32 add.
    """
    n, _ = weight.shape
    n_pad = max(_LANE, _round_up(n, _LANE))
    w_t = jnp.transpose(weight).astype(jnp.float32)           # (H, N)
    w_t = jnp.pad(w_t, ((0, 0), (0, n_pad - n)))               # (H, n_pad)
    b2d = bias.reshape(1, n).astype(jnp.float32)               # (1, N)
    return w_t, b2d


def ggm_head_forward(x, w_t, b2d, *, block_m=512):
    """GGMHead forward (PyTorch nn.Linear semantics): y = x @ weight.T + bias.

    x:   (B, H) activations (f32 or bf16)
    w_t: (H, 128) prepared weight, b2d: (1, N) prepared bias
    """
    B, H = x.shape
    n_pad = w_t.shape[1]
    N = b2d.shape[1]

    # ---- batch tile selection ------------------------------------------------
    tm = min(block_m, B)
    if tm == B and B > 8:
        # A single block would cover the whole batch: split in two so the
        # "parallel" grid axis can shard across v7x's two TensorCores.
        half = _round_up(pl.cdiv(B, 2), 8)
        if half < B:
            tm = half
    # VMEM cap: double-buffered x tile stays well under the smallest scoped
    # default (16 MiB on v5e); also leaves headroom on v7x's 64 MiB physical VMEM.
    itemsize = jnp.dtype(x.dtype).itemsize
    max_tm = max(8, ((12 * 1024 * 1024) // (2 * H * itemsize)) // 8 * 8)
    tm = min(tm, max_tm)
    if tm < B:
        tm = _round_up(tm, 8)      # sublane-aligned tiles when the batch is tiled
    tm = min(tm, B)                # a full-dim block (== B) is always legal

    grid_m = pl.cdiv(B, tm)        # ragged last block is masked by Pallas; no jnp.pad of x

    cost = pl.CostEstimate(
        flops=2 * B * H * N,
        transcendentals=0,
        bytes_accessed=B * H * itemsize + B * N * itemsize
        + w_t.size * 4 + b2d.size * 4,
    )

    out = pl.pallas_call(
        _ggm_head_kernel,
        out_shape=jax.ShapeDtypeStruct((B, N), x.dtype),
        grid_spec=pltpu.PrefetchScalarGridSpec(
            num_scalar_prefetch=0,
            grid=(grid_m,),
            in_specs=[
                pl.BlockSpec((tm, H), lambda i: (i, 0)),       # activations: streamed
                pl.BlockSpec((H, n_pad), lambda i: (0, 0)),    # weight: resident
                pl.BlockSpec((1, N), lambda i: (0, 0)),        # bias: resident
            ],
            out_specs=pl.BlockSpec((tm, N), lambda i: (i, 0)),
        ),
        compiler_params=pltpu.CompilerParams(
            dimension_semantics=("parallel",),
        ),
        cost_estimate=cost,
    )(x, w_t, b2d)
    return out


if __name__ == "__main__":
    # Small shapes consistent with the module: batch=2, hidden=32, out_features=2.
    B, H = 2, 32

    key = jax.random.PRNGKey(0)
    k_x, k_w, k_b = jax.random.split(key, 3)

    x = jax.random.normal(k_x, (B, H), dtype=jnp.float32)
    # Deterministic synthetic parameters (not a checkpoint load).
    weight = jax.random.normal(k_w, (2, H), dtype=jnp.float32) * 0.02
    bias = jax.random.normal(k_b, (2,), dtype=jnp.float32) * 0.02

    # One-time parameter prep (hoisted out of the per-call path).
    w_t, b2d = prepare_ggm_head_params(weight, bias)

    out = ggm_head_forward(x, w_t, b2d)
    out = jax.block_until_ready(out)
    ref = x @ weight.T + bias
    assert out.shape == (B, 2)
    assert jnp.allclose(out, ref, atol=1e-5, rtol=1e-5)

    # Also exercise the multi-step / ragged-grid path (B not a multiple of the tile).
    B2 = 300
    x2 = jax.random.normal(jax.random.PRNGKey(1), (B2, H), dtype=jnp.float32)
    out2 = jax.block_until_ready(ggm_head_forward(x2, w_t, b2d))
    ref2 = x2 @ weight.T + bias
    assert out2.shape == (B2, 2)
    assert jnp.allclose(out2, ref2, atol=1e-5, rtol=1e-5)

    print("KERNEL_OK")
</pallas_src>

<mosaic_0001>
module attributes {stable_mosaic.version = 11 : i64} {
  func.func @_ggm_head_kernel(%arg0: i32, %arg1: memref<2x32xf32, #tpu.memory_space<vmem>>, %arg2: memref<32x128xf32, #tpu.memory_space<vmem>>, %arg3: memref<1x2xf32, #tpu.memory_space<vmem>>, %arg4: memref<2x2xf32, #tpu.memory_space<vmem>>) attributes {dimension_semantics = [#tpu.dimension_semantics<parallel>], iteration_bounds = array<i64: 1>, scalar_prefetch = 0 : i64, scratch_operands = 0 : i64, tpu.core_type = #tpu.core_type<tc>, window_params = [{transform_indices = @transform_0, window_bounds = array<i64: 2, 32>}, {pipeline_mode = #tpu.pipeline_mode<synchronous>, transform_indices = @transform_1, window_bounds = array<i64: 32, 128>}, {pipeline_mode = #tpu.pipeline_mode<synchronous>, transform_indices = @transform_2, window_bounds = array<i64: 1, 2>}, {transform_indices = @transform_3, window_bounds = array<i64: 2, 2>}]} {
    %c0 = arith.constant 0 : index
    %c0_0 = arith.constant 0 : index
    %0 = vector.load %arg1[%c0, %c0_0] : memref<2x32xf32, #tpu.memory_space<vmem>>, vector<2x32xf32>
    %c0_1 = arith.constant 0 : index
    %c0_2 = arith.constant 0 : index
    %1 = vector.load %arg2[%c0_1, %c0_2] : memref<32x128xf32, #tpu.memory_space<vmem>>, vector<32x128xf32>
    %cst = arith.constant dense<0.000000e+00> : vector<2x128xf32>
    %2 = tpu.matmul %0, %1, %cst {dimension_numbers = #tpu.dot_dimension_numbers<[1], [0], [0], [1], [0, 0, 1, 1], [], []>} : vector<2x32xf32>, vector<32x128xf32>, vector<2x128xf32> -> vector<2x128xf32>
    %3 = vector.extract_strided_slice %2 {offsets = [0, 0], sizes = [2, 2], strides = [1, 1]} : vector<2x128xf32> to vector<2x2xf32>
    %c0_3 = arith.constant 0 : index
    %c0_4 = arith.constant 0 : index
    %4 = vector.load %arg3[%c0_3, %c0_4] : memref<1x2xf32, #tpu.memory_space<vmem>>, vector<1x2xf32>
    %5 = vector.broadcast %4 : vector<1x2xf32> to vector<2x2xf32>
    %6 = arith.addf %3, %5 : vector<2x2xf32>
    %c0_5 = arith.constant 0 : index
    %c0_6 = arith.constant 0 : index
    %7 = vector.load %arg4[%c0_5, %c0_6] : memref<2x2xf32, #tpu.memory_space<vmem>>, vector<2x2xf32>
    tpu.vector_store %arg4[%c0_5, %c0_6], %6 {strides = array<i32>} : memref<2x2xf32, #tpu.memory_space<vmem>>, vector<2x2xf32>,
    return
  }
  func.func @transform_0(%arg0: i32) -> (i32, i32) {
    %c0_i32 = arith.constant 0 : i32
    %c0_i32_0 = arith.constant 0 : i32
    return %arg0, %c0_i32 : i32, i32
  }
  func.func @transform_1(%arg0: i32) -> (i32, i32) {
    %c0_i32 = arith.constant 0 : i32
    %c0_i32_0 = arith.constant 0 : i32
    %c0_i32_1 = arith.constant 0 : i32
    return %c0_i32, %c0_i32_0 : i32, i32
  }
  func.func @transform_2(%arg0: i32) -> (i32, i32) {
    %c0_i32 = arith.constant 0 : i32
    %c0_i32_0 = arith.constant 0 : i32
    %c0_i32_1 = arith.constant 0 : i32
    return %c0_i32, %c0_i32_0 : i32, i32
  }
  func.func @transform_3(%arg0: i32) -> (i32, i32) {
    %c0_i32 = arith.constant 0 : i32
    %c0_i32_0 = arith.constant 0 : i32
    return %arg0, %c0_i32 : i32, i32
  }
}

</mosaic_0001>

<bundles_post_ra>
// kernel: tpu_custom_call.1
= control target key start
LH: loop header
LB: loop body
LE: loop exit
PB: predicated region body
PF: predicated region fallthrough
CT: control target
= control target key end

     0   :  { %8 = vsyncpa [#allocation3], 0  ;;  %s221_s0 = inlined_call_operand.hbm [shape: f32[2,32], index: 0, kind: input, shape index: {}]   ;;  %s222_s1 = inlined_call_operand.hbm [shape: f32[32,128], index: 1, kind: input, shape index: {}]   ;;  %s223_s2 = inlined_call_operand.vmem [shape: f32[1,2], index: 2, kind: input, shape index: {}]   ;;  %s224_s3 = inlined_call_operand.hbm [shape: f32[2,2], index: 3, kind: output, shape index: {}]  }
   0x1   :  { %9 = vsyncpa [#allocation6], 0 }
   0x2   :  { %10 = vsyncpa [#allocation4], 0  ;;  %s16_s14 = sshll.u32 %s221_s0, 4  ;;  %s184_s15 = smov [#allocation2]   ;;  %s17_s14 = int_to_ptr.hbm [resolvable:$true] %s16_s14 }
   0x3   :  { %s18_s16 = sshll.u32 %s184_s15, 4  ;;  %s26_s19 = sshll.u32 %s222_s1, 4  ;;  %s19_s16 = int_to_ptr.vmem [resolvable:$true] %s18_s16  ;;  %s27_s19 = int_to_ptr.hbm [resolvable:$true] %s26_s19 }
   0x4   :  { %21 = dma.hbm_to_vmem [thread:$0]  %s17_s14, 32, %s19_s16, [#allocation3]  }
   0x5   :  { %s185_s20 = smov [#allocation5]   ;;  %s186_s22 = smov 128  }
   0x6   :  { %s28_s21 = sshll.u32 %s185_s20, 4  ;;  %s187_s23 = smov 8   ;;  %s29_s21 = int_to_ptr.vmem [resolvable:$true] %s28_s21 }
   0x7   :  { %34 = dma.hbm_to_vmem [thread:$0]  %s27_s19, 512, %s29_s21, [#allocation6], %s186_s22, %s186_s22, %s187_s23  }
   0x8   :  { %178 = dma.done.wait [#allocation3], 32  }
   0x9   :  { %179 = vsyncadd [#allocation3], 4294967264 }
   0xa   :  { %180 = dma.done.wait [#allocation6], 512  }
   0xb   :  { %181 = vsyncadd [#allocation6], 4294966784  ;;  %v49_v0 = vld [vmem:[#allocation5 + $0x18] sm:$0xff]  ;;  %v48_v1 = vld [vmem:[#allocation5 + $0x10] sm:$0xff]  ;;  %vm50_vm0 = vcmask 261120   ;;  %s188_s24 = smov [#allocation7]  }
   0xc   :  { %66 = vmatpush.msra.mxu0 %v49_v0  ;;  %v47_v2 = vld [vmem:[#allocation5 + $0x8] sm:$0xff]  ;;  %v46_v3 = vld [vmem:[#allocation5] sm:$0xff]  ;;  %v45_v4 = vld [vmem:[#allocation2] sm:$0x3]  ;;  %s86_s25 = sshll.u32 %s188_s24, 4  ;;  %s88_s28 = sshll.u32 %s224_s3, 4  ;;  %s87_s25 = int_to_ptr.vmem [resolvable:$true] %s86_s25  ;;  %s89_s28 = int_to_ptr.hbm [resolvable:$true] %s88_s28 }
   0xd   :  { %v105_v5 = vld [vmem:[%s223_s2] ss:$0 sm:$0xff]  ;;  %vm79_vm1 = vcmask 9216  }
   0xe   :  { %67 = vmatpush.msra.mxu0 %v48_v1 }
  0x10   :  { %68 = vmatpush.msra.mxu0 %v47_v2 }
  0x12   :  { %69 = vmatpush.msra.mxu0 %v46_v3 }
  0x13   :  { %99 = vmatmul.msk.f32.vlgmr.msra.gmra.mxu0 %vm50_vm0, %v45_v4 }
  0x90   :  { %v71_v6 = vpop.f32.mrf.mxu0 }
  0x91   :  { %v78_v7 = vadd.f32 %v105_v5, %v71_v6 }
  0x93   :  { %80 = vst.msk [vmem:[#allocation7] sm:$0x3] %vm79_vm1, %v78_v7 }
  0x94   :  { %91 = dma.vmem_to_hbm [thread:$0]  %s87_s25, 32, %s89_s28, [#allocation4]  }
  0x95   :  { %182 = dma.done.wait [#allocation4], 32  }
  0x96   :  { %183 = vsyncadd [#allocation4], 4294967264 }
  0x97   :  { %96 = vsyncpa [#allocation3], 1 }
  0x98   :  { %97 = vsyncpa [#allocation6], 1 }
  0x99   :  { %98 = vsyncpa [#allocation4], 1 }

</bundles_post_ra>
